<compile_context>
chip_gen: v5e
topology: v5e:2x2
jax: 0.10.0
libtpu: 0.0.40
codegen_flags: <defaults>
</compile_context>

<pallas_src>
import functools

import jax
import jax.numpy as jnp
from jax import lax
from jax.experimental import pallas as pl
from jax.experimental.pallas import tpu as pltpu


_INV_SQRT2 = 0.7071067811865476


def _gelu_exact(h):
    # exact GELU: 0.5 * h * (1 + erf(h / sqrt(2)))  (nn.GELU() default)
    return 0.5 * h * (1.0 + lax.erf(h * jnp.float32(_INV_SQRT2)))


# --------------------------------------------------------------------------
# Kernels
# --------------------------------------------------------------------------
def _ffn_kernel_resident(x_ref, w1_ref, b1_ref, w2_ref, b2_ref, o_ref,
                         *, compute_dtype):
    """W1/W2 fully resident: one row tile per grid step, no accumulator."""
    x = x_ref[...].astype(compute_dtype)
    h = jnp.dot(x, w1_ref[...], preferred_element_type=jnp.float32)
    h = _gelu_exact(h + b1_ref[...].astype(jnp.float32))
    # Dropout(p=0.0) is identity (eval semantics); nothing to do.
    y = jnp.dot(h.astype(w2_ref.dtype), w2_ref[...],
                preferred_element_type=jnp.float32)
    o_ref[...] = (y + b2_ref[...].astype(jnp.float32)).astype(o_ref.dtype)


def _ffn_kernel_chunked(x_ref, w1_ref, b1_ref, w2_ref, b2_ref, o_ref, acc_ref,
                        *, compute_dtype):
    """One (row-tile, H-chunk) step; acc_ref accumulates the second matmul."""
    h_idx = pl.program_id(1)

    x = x_ref[...].astype(compute_dtype)
    h = jnp.dot(x, w1_ref[...], preferred_element_type=jnp.float32)
    h = _gelu_exact(h + b1_ref[...].astype(jnp.float32))
    contrib = jnp.dot(h.astype(w2_ref.dtype), w2_ref[...],
                      preferred_element_type=jnp.float32)

    @pl.when(h_idx == 0)
    def _first():
        acc_ref[...] = contrib          # init-with-first-chunk (no zero fill)

    @pl.when(h_idx > 0)
    def _accumulate():
        acc_ref[...] += contrib

    @pl.when(h_idx == pl.num_programs(1) - 1)
    def _finalize():
        o_ref[...] = (acc_ref[...] + b2_ref[...].astype(jnp.float32)
                      ).astype(o_ref.dtype)


# --------------------------------------------------------------------------
# Tiling / budgeting helpers
# --------------------------------------------------------------------------
def _round_up(x, m):
    return ((x + m - 1) // m) * m


def _tpu_budget():
    """Returns (physical_vmem_bytes, device_kind_lower, has_two_tensorcores)."""
    kind = ""
    try:
        kind = jax.devices()[0].device_kind.lower()
    except Exception:
        pass
    phys = None
    try:
        info = pltpu.get_tpu_info()
        phys = int(getattr(info, "vmem_capacity_bytes", 0)) or None
    except Exception:
        phys = None
    if phys is None:
        phys = (64 << 20) if "v7" in kind else (128 << 20)
    return phys, kind, ("v7" in kind)


def _resident_footprint(tile_m, D, H, x_item, out_item, w_item, weight_bufs):
    return int(
        2 * tile_m * D * x_item                 # x tiles (double-buffered)
        + 2 * tile_m * D * out_item             # out tiles (double-buffered)
        + weight_bufs * 2 * D * H * w_item      # W1 + W2 (1 or 2 buffers)
        + 2 * (H + D) * 4                       # biases (f32)
        + tile_m * H * (4 + w_item)             # GELU intermediate f32 + cast
        + tile_m * D * (w_item + 4))            # cast-x + f32 result temporaries


def _chunked_footprint(tile_m, tile_h, D, x_item, out_item, w_item):
    return int(
        2 * tile_m * D * x_item                 # x tiles
        + 2 * tile_m * D * out_item             # out tiles
        + tile_m * D * 4                        # f32 accumulator scratch
        + 2 * 2 * D * tile_h * w_item           # W1 + W2 chunks, 2x buffered
        + 2 * 2 * (tile_h + D) * 4              # bias chunks
        + tile_m * tile_h * (4 + w_item)        # GELU intermediate
        + tile_m * D * (w_item + 4))            # cast-x + per-chunk contrib


def _pick_tile_h(H, fits, mxu_mult):
    """Largest chunk that divides H, is a multiple of mxu_mult (else 128),
    and satisfies the VMEM predicate `fits`."""
    for mult in (mxu_mult, 128):
        if mult > H:
            continue
        cands = [c for c in range(mult, H, mult) if H % c == 0 and fits(c)]
        if cands:
            return max(cands)
    return None


def _spec(shape, index_map, *, single_buffer=False):
    """BlockSpec, optionally single-buffered (for blocks that never change)."""
    if single_buffer:
        for make in (lambda: pl.Buffered(1), lambda: pl.Buffered(buffer_count=1)):
            try:
                return pl.BlockSpec(shape, index_map, pipeline_mode=make())
            except Exception:
                continue
    return pl.BlockSpec(shape, index_map)


# --------------------------------------------------------------------------
# Wrapper
# --------------------------------------------------------------------------
def feed_forward(x, w1, b1, w2, b2, *, tile_m=None, tile_h=None,
                 compute_dtype=jnp.bfloat16, single_buffer_weights=None):
    """x: (B, N, D). w1: (D, H), b1: (H,), w2: (H, D), b2: (D,).

    Returns (B, N, D) in x.dtype.  Matmuls run in `compute_dtype` on the MXU
    with f32 accumulation; GELU and bias adds are in f32.  NOTE: the default
    bf16 compute path is an explicit speed/precision trade-off vs the f32
    PyTorch reference -- pass compute_dtype=jnp.float32 for bit-closer output.
    For best performance store W1/W2 already in compute_dtype (they are only
    cast here when they are not).
    """
    B, N, D = x.shape
    H = w1.shape[1]
    M = B * N
    out_dtype = x.dtype
    x_item = jnp.dtype(x.dtype).itemsize
    out_item = jnp.dtype(out_dtype).itemsize
    w_item = jnp.dtype(compute_dtype).itemsize

    phys_vmem, kind, two_cores = _tpu_budget()
    headroom = max(8 << 20, phys_vmem // 10)
    vmem_cap = phys_vmem - headroom          # budget that drives tile selection
    mxu_mult = 128 if "v5" in kind else 256  # v6e/v7x MXU is 256 wide

    # ---- row tiling --------------------------------------------------------
    pack = 16 if min(x_item, out_item) == 2 else 8
    user_tile_m = tile_m
    if tile_m is None:
        tile_m = 512 if w_item == 2 else 256
    tile_m = max(pack, _round_up(int(tile_m), pack))
    if M <= tile_m:
        tile_m = _round_up(M, pack)
    if two_cores and user_tile_m is None:
        # v7x: guarantee >= 2 row tiles so the "parallel" axis uses both TCs.
        half = max(pack, _round_up(-(-M // 2), pack))
        if half < tile_m:
            tile_m = half

    def res_fp(tm, bufs):
        return _resident_footprint(tm, D, H, x_item, out_item, w_item, bufs)

    # ---- resident (tile_h == H) vs H-chunked -------------------------------
    user_tile_h = tile_h
    if user_tile_h is not None:
        tile_h = int(user_tile_h)
        if tile_h != H:
            assert H % tile_h == 0 and tile_h % 128 == 0, (
                "tile_h must divide H and be a multiple of 128 (or equal H)")
        resident = (tile_h == H)
    else:
        resident = res_fp(tile_m, 1) <= vmem_cap
        if not resident and user_tile_m is None:
            # Prefer shrinking tile_m: weights then stream from HBM exactly
            # once.  This is the right trade on v7x's 64 MiB VMEM.
            tm = tile_m
            while tm > max(pack, 128):
                tm = max(pack, _round_up(tm // 2, pack))
                if res_fp(tm, 1) <= vmem_cap:
                    tile_m = tm
                    resident = True
                    break
        if resident:
            tile_h = H
        else:
            tm_cands = [tile_m]
            if user_tile_m is None and "v5" in kind and w_item == 2 and M >= 1024:
                # v5e: bigger row tiles => fewer weight re-streams from HBM.
                tm_cands = [1024, tile_m]
            chosen = None
            for tm in tm_cands:
                tm = max(pack, _round_up(int(tm), pack))
                th = _pick_tile_h(
                    H,
                    lambda c, tm=tm: _chunked_footprint(
                        tm, c, D, x_item, out_item, w_item) <= vmem_cap,
                    mxu_mult)
                if th is not None:
                    chosen = (tm, th)
                    break
            if chosen is None:
                if H % 128 == 0:
                    chosen = (tile_m, 128)      # smallest legal chunk
                else:
                    resident = True             # cannot chunk legally
                    tile_h = H
            if not resident:
                tile_m, tile_h = chosen

    Mp = _round_up(M, tile_m)
    grid_m = Mp // tile_m

    # ---- footprint, single-buffering decision, VMEM limit ------------------
    if resident:
        fp2 = res_fp(tile_m, 2)
        fp1 = res_fp(tile_m, 1)
        if single_buffer_weights is None:
            use_single = (fp2 > vmem_cap) and (fp1 <= vmem_cap)
        else:
            use_single = bool(single_buffer_weights)
        est = fp1 if use_single else fp2
    else:
        use_single = False
        est = _chunked_footprint(tile_m, tile_h, D, x_item, out_item, w_item)
    # Never declare a limit below the modeled footprint; cap near physical.
    vmem_limit = int(min(max(est + (4 << 20), 16 << 20), phys_vmem - (2 << 20)))

    # ---- prepare operands ---------------------------------------------------
    # x keeps its dtype; the cast to compute_dtype happens inside the kernel.
    x2 = x.reshape(M, D)
    if Mp > M:
        x2 = jnp.pad(x2, ((0, Mp - M), (0, 0)))
    # TODO(synk): callers should pre-cast W1/W2 to compute_dtype at param-init
    # time; the casts below only run when they have not.
    w1c = w1 if w1.dtype == compute_dtype else w1.astype(compute_dtype)
    w2c = w2 if w2.dtype == compute_dtype else w2.astype(compute_dtype)
    b1_2d = b1.reshape(1, H).astype(jnp.float32)
    b2_2d = b2.reshape(1, D).astype(jnp.float32)

    if resident:
        kernel = functools.partial(_ffn_kernel_resident,
                                   compute_dtype=compute_dtype)
        grid_spec = pltpu.PrefetchScalarGridSpec(
            num_scalar_prefetch=0,
            grid=(grid_m,),
            in_specs=[
                pl.BlockSpec((tile_m, D), lambda i: (i, 0)),                 # x
                _spec((D, H), lambda i: (0, 0), single_buffer=use_single),   # W1
                _spec((1, H), lambda i: (0, 0), single_buffer=use_single),   # b1
                _spec((H, D), lambda i: (0, 0), single_buffer=use_single),   # W2
                _spec((1, D), lambda i: (0, 0), single_buffer=use_single),   # b2
            ],
            out_specs=pl.BlockSpec((tile_m, D), lambda i: (i, 0)),
            scratch_shapes=[],
        )
        dim_sem = ("parallel",)
    else:
        kernel = functools.partial(_ffn_kernel_chunked,
                                   compute_dtype=compute_dtype)
        grid_spec = pltpu.PrefetchScalarGridSpec(
            num_scalar_prefetch=0,
            grid=(grid_m, H // tile_h),
            in_specs=[
                pl.BlockSpec((tile_m, D), lambda i, h: (i, 0)),    # x tile
                pl.BlockSpec((D, tile_h), lambda i, h: (0, h)),    # W1 chunk
                pl.BlockSpec((1, tile_h), lambda i, h: (0, h)),    # b1 chunk
                pl.BlockSpec((tile_h, D), lambda i, h: (h, 0)),    # W2 chunk
                pl.BlockSpec((1, D),      lambda i, h: (0, 0)),    # b2
            ],
            out_specs=pl.BlockSpec((tile_m, D), lambda i, h: (i, 0)),
            scratch_shapes=[pltpu.VMEM((tile_m, D), jnp.float32)],
        )
        dim_sem = ("parallel", "arbitrary")

    out2 = pl.pallas_call(
        kernel,
        out_shape=jax.ShapeDtypeStruct((Mp, D), out_dtype),
        grid_spec=grid_spec,
        compiler_params=pltpu.CompilerParams(
            dimension_semantics=dim_sem,
            vmem_limit_bytes=vmem_limit,
        ),
    )(x2, w1c, b1_2d, w2c, b2_2d)

    return out2[:M].reshape(B, N, D)


# --------------------------------------------------------------------------
# Reference + tests
# --------------------------------------------------------------------------
def _reference(x, w1, b1, w2, b2):
    h = jnp.einsum("bnd,dh->bnh", x, w1) + b1
    h = 0.5 * h * (1.0 + lax.erf(h / jnp.sqrt(2.0)))
    return jnp.einsum("bnh,hd->bnd", h, w2) + b2


if __name__ == "__main__":
    key = jax.random.PRNGKey(0)

    def make_params(kk, dim, hidden_dim):
        k_w1, k_b1, k_w2, k_b2 = jax.random.split(kk, 4)
        lim1 = 1.0 / (dim ** 0.5)
        lim2 = 1.0 / (hidden_dim ** 0.5)
        w1 = jax.random.uniform(k_w1, (dim, hidden_dim), jnp.float32, -lim1, lim1)
        b1 = jax.random.uniform(k_b1, (hidden_dim,), jnp.float32, -lim1, lim1)
        w2 = jax.random.uniform(k_w2, (hidden_dim, dim), jnp.float32, -lim2, lim2)
        b2 = jax.random.uniform(k_b2, (dim,), jnp.float32, -lim2, lim2)
        return w1, b1, w2, b2

    # --- test 1: module-spec shapes, resident path, bf16 + f32 compute -----
    B, N, dim, hidden_dim = 2, 8, 32, 64
    k_x, k_p, k_x2, k_p2 = jax.random.split(key, 4)
    x = jax.random.normal(k_x, (B, N, dim), dtype=jnp.float32)
    w1, b1, w2, b2 = make_params(k_p, dim, hidden_dim)

    out = jax.jit(feed_forward)(x, w1, b1, w2, b2)
    out = jax.block_until_ready(out)
    ref = _reference(x, w1, b1, w2, b2)
    assert out.shape == (B, N, dim)
    assert jnp.allclose(out, ref, atol=3e-2, rtol=3e-2), "bf16 path mismatch"

    out_f32 = jax.jit(functools.partial(feed_forward,
                                        compute_dtype=jnp.float32))(
        x, w1, b1, w2, b2)
    out_f32 = jax.block_until_ready(out_f32)
    assert jnp.allclose(out_f32, ref, atol=1e-5, rtol=1e-5), "f32 path mismatch"

    # --- test 2: ragged row count + multi-tile grid + H-chunked kernel -----
    B2, N2, dim2, hidden2 = 2, 200, 32, 256      # M=400 does not divide tile_m
    x_big = jax.random.normal(k_x2, (B2, N2, dim2), dtype=jnp.float32)
    w1b, b1b, w2b, b2b = make_params(k_p2, dim2, hidden2)
    out_big = jax.jit(functools.partial(feed_forward, tile_m=128, tile_h=128,
                                        compute_dtype=jnp.float32))(
        x_big, w1b, b1b, w2b, b2b)
    out_big = jax.block_until_ready(out_big)
    ref_big = _reference(x_big, w1b, b1b, w2b, b2b)
    assert out_big.shape == (B2, N2, dim2)
    assert jnp.allclose(out_big, ref_big, atol=1e-4, rtol=1e-4), \
        "tiled/padded chunked path mismatch"

    print("KERNEL_OK")
</pallas_src>

<mosaic_0001>
module attributes {stable_mosaic.version = 11 : i64} {
  func.func @_ffn_kernel_resident(%arg0: i32, %arg1: memref<16x32xf32, #tpu.memory_space<vmem>>, %arg2: memref<32x64xbf16, #tpu.memory_space<vmem>>, %arg3: memref<1x64xf32, #tpu.memory_space<vmem>>, %arg4: memref<64x32xbf16, #tpu.memory_space<vmem>>, %arg5: memref<1x32xf32, #tpu.memory_space<vmem>>, %arg6: memref<16x32xf32, #tpu.memory_space<vmem>>) attributes {dimension_semantics = [#tpu.dimension_semantics<parallel>], iteration_bounds = array<i64: 1>, scalar_prefetch = 0 : i64, scratch_operands = 0 : i64, tpu.core_type = #tpu.core_type<tc>, window_params = [{transform_indices = @transform_0, window_bounds = array<i64: 16, 32>}, {pipeline_mode = #tpu.pipeline_mode<synchronous>, transform_indices = @transform_1, window_bounds = array<i64: 32, 64>}, {pipeline_mode = #tpu.pipeline_mode<synchronous>, transform_indices = @transform_2, window_bounds = array<i64: 1, 64>}, {pipeline_mode = #tpu.pipeline_mode<synchronous>, transform_indices = @transform_3, window_bounds = array<i64: 64, 32>}, {pipeline_mode = #tpu.pipeline_mode<synchronous>, transform_indices = @transform_4, window_bounds = array<i64: 1, 32>}, {transform_indices = @transform_5, window_bounds = array<i64: 16, 32>}]} {
    %c0 = arith.constant 0 : index
    %c0_0 = arith.constant 0 : index
    %0 = vector.load %arg1[%c0, %c0_0] : memref<16x32xf32, #tpu.memory_space<vmem>>, vector<16x32xf32>
    %1 = arith.truncf %0 : vector<16x32xf32> to vector<16x32xbf16>
    %c0_1 = arith.constant 0 : index
    %c0_2 = arith.constant 0 : index
    %2 = vector.load %arg2[%c0_1, %c0_2] : memref<32x64xbf16, #tpu.memory_space<vmem>>, vector<32x64xbf16>
    %cst = arith.constant dense<0.000000e+00> : vector<16x64xf32>
    %3 = tpu.matmul %1, %2, %cst {dimension_numbers = #tpu.dot_dimension_numbers<[1], [0], [0], [1], [0, 0, 1, 1], [], []>} : vector<16x32xbf16>, vector<32x64xbf16>, vector<16x64xf32> -> vector<16x64xf32>
    %c0_3 = arith.constant 0 : index
    %c0_4 = arith.constant 0 : index
    %4 = vector.load %arg3[%c0_3, %c0_4] : memref<1x64xf32, #tpu.memory_space<vmem>>, vector<1x64xf32>
    %5 = vector.broadcast %4 : vector<1x64xf32> to vector<16x64xf32>
    %6 = arith.addf %3, %5 : vector<16x64xf32>
    %cst_5 = arith.constant 5.000000e-01 : f32
    %7 = vector.broadcast %cst_5 : f32 to vector<16x64xf32>
    %8 = arith.mulf %7, %6 : vector<16x64xf32>
    %cst_6 = arith.constant 0.707106769 : f32
    %9 = vector.broadcast %cst_6 : f32 to vector<16x64xf32>
    %10 = arith.mulf %6, %9 : vector<16x64xf32>
    %11 = math.erf %10 : vector<16x64xf32>
    %cst_7 = arith.constant 1.000000e+00 : f32
    %12 = vector.broadcast %cst_7 : f32 to vector<16x64xf32>
    %13 = arith.addf %12, %11 : vector<16x64xf32>
    %14 = arith.mulf %8, %13 : vector<16x64xf32>
    %15 = arith.truncf %14 : vector<16x64xf32> to vector<16x64xbf16>
    %c0_8 = arith.constant 0 : index
    %c0_9 = arith.constant 0 : index
    %16 = vector.load %arg4[%c0_8, %c0_9] : memref<64x32xbf16, #tpu.memory_space<vmem>>, vector<64x32xbf16>
    %cst_10 = arith.constant dense<0.000000e+00> : vector<16x32xf32>
    %17 = tpu.matmul %15, %16, %cst_10 {dimension_numbers = #tpu.dot_dimension_numbers<[1], [0], [0], [1], [0, 0, 1, 1], [], []>} : vector<16x64xbf16>, vector<64x32xbf16>, vector<16x32xf32> -> vector<16x32xf32>
    %c0_11 = arith.constant 0 : index
    %c0_12 = arith.constant 0 : index
    %18 = vector.load %arg5[%c0_11, %c0_12] : memref<1x32xf32, #tpu.memory_space<vmem>>, vector<1x32xf32>
    %19 = vector.broadcast %18 : vector<1x32xf32> to vector<16x32xf32>
    %20 = arith.addf %17, %19 : vector<16x32xf32>
    %c0_13 = arith.constant 0 : index
    %c0_14 = arith.constant 0 : index
    %21 = vector.load %arg6[%c0_13, %c0_14] : memref<16x32xf32, #tpu.memory_space<vmem>>, vector<16x32xf32>
    tpu.vector_store %arg6[%c0_13, %c0_14], %20 {strides = array<i32>} : memref<16x32xf32, #tpu.memory_space<vmem>>, vector<16x32xf32>,
    return
  }
  func.func @transform_0(%arg0: i32) -> (i32, i32) {
    %c0_i32 = arith.constant 0 : i32
    %c0_i32_0 = arith.constant 0 : i32
    return %arg0, %c0_i32 : i32, i32
  }
  func.func @transform_1(%arg0: i32) -> (i32, i32) {
    %c0_i32 = arith.constant 0 : i32
    %c0_i32_0 = arith.constant 0 : i32
    %c0_i32_1 = arith.constant 0 : i32
    return %c0_i32, %c0_i32_0 : i32, i32
  }
  func.func @transform_2(%arg0: i32) -> (i32, i32) {
    %c0_i32 = arith.constant 0 : i32
    %c0_i32_0 = arith.constant 0 : i32
    %c0_i32_1 = arith.constant 0 : i32
    return %c0_i32, %c0_i32_0 : i32, i32
  }
  func.func @transform_3(%arg0: i32) -> (i32, i32) {
    %c0_i32 = arith.constant 0 : i32
    %c0_i32_0 = arith.constant 0 : i32
    %c0_i32_1 = arith.constant 0 : i32
    return %c0_i32, %c0_i32_0 : i32, i32
  }
  func.func @transform_4(%arg0: i32) -> (i32, i32) {
    %c0_i32 = arith.constant 0 : i32
    %c0_i32_0 = arith.constant 0 : i32
    %c0_i32_1 = arith.constant 0 : i32
    return %c0_i32, %c0_i32_0 : i32, i32
  }
  func.func @transform_5(%arg0: i32) -> (i32, i32) {
    %c0_i32 = arith.constant 0 : i32
    %c0_i32_0 = arith.constant 0 : i32
    return %arg0, %c0_i32 : i32, i32
  }
}

</mosaic_0001>

<bundles_post_ra>
// kernel: feed_forward.1
= control target key start
LH: loop header
LB: loop body
LE: loop exit
PB: predicated region body
PF: predicated region fallthrough
CT: control target
= control target key end

     0   :  { %s382_s0 = inlined_call_operand.vmem [shape: f32[16,32], index: 0, kind: input, shape index: {}]   ;;  %s383_s1 = inlined_call_operand.vmem [shape: bf16[32,64], index: 1, kind: input, shape index: {}]   ;;  %s384_s2 = inlined_call_operand.vmem [shape: f32[1,64], index: 2, kind: input, shape index: {}]   ;;  %s385_s3 = inlined_call_operand.vmem [shape: bf16[64,32], index: 3, kind: input, shape index: {}]   ;;  %s386_s4 = inlined_call_operand.vmem [shape: f32[1,32], index: 4, kind: input, shape index: {}]   ;;  %s387_s5 = inlined_call_operand.hbm [shape: f32[16,32], index: 5, kind: output, shape index: {}]  }
   0x1   :  { %v255_v0 = vld [vmem:[%s383_s1 + $0x8] sm:$0xff]  ;;  %v254_v1 = vld [vmem:[%s383_s1] sm:$0xff] }
   0x2   :  { %v22_v2 = vld [vmem:[%s382_s0] sm:$0xff]  ;;  %55 = vmatpush.bf16.msra.mxu0 %v255_v0  ;;  %v23_v3 = vld [vmem:[%s382_s0 + $0x8] sm:$0xff] }
   0x3   :  { %10 = vsyncpa [#allocation3], 0  ;;  %v24_v4 = vpack.c.bf16 %v23_v3, %v22_v2  ;;  %vm45_vm0 = vcmask 261120   ;;  %v263_v5 = vld [vmem:[%s384_s2] ss:$0 sm:$0xff]  ;;  %v259_v24 = vld [vmem:[%s385_s3 + $0x18] sm:$0xff] }
   0x4   :  { %196 = vmatpush.bf16.msra.mxu1 %v259_v24  ;;  %v258_v32 = vld [vmem:[%s385_s3 + $0x10] sm:$0xff]  ;;  %v257_v40 = vld [vmem:[%s385_s3 + $0x8] sm:$0xff]  ;;  %v256_v46 = vld [vmem:[%s385_s3] sm:$0xff]  ;;  %vm188_vm9 = vcmask 523264   ;;  %s295_s9 = smov [#allocation2]   ;;  %s214_s13 = sshll.u32 %s387_s5, 4  ;;  %s215_s13 = int_to_ptr.hbm [resolvable:$true] %s214_s13 }
   0x5   :  { %s212_s10 = sshll.u32 %s295_s9, 4  ;;  %s296_s14 = smov 128   ;;  %s213_s10 = int_to_ptr.vmem [resolvable:$true] %s212_s10 }
   0x6   :  { %56 = vmatpush.bf16.msra.mxu0 %v254_v1  ;;  %s297_s15 = smov 8  }
   0x8   :  { %197 = vmatpush.bf16.msra.mxu1 %v258_v32 }
   0x9   :  { %234 = vmatmul.msk.bf16.vlgmr.msra.gmra.mxu0 %vm45_vm0, %v24_v4 }
   0xc   :  { %198 = vmatpush.bf16.msra.mxu1 %v257_v40 }
  0x10   :  { %199 = vmatpush.bf16.msra.mxu1 %v256_v46 }
  0x86   :  { %v58_v6 = vpop.f32.mrf.mxu0 }
  0x87   :  { %v344_v7 = vadd.f32 %v263_v5, %v58_v6 }
  0x89   :  { %v347_v8 = vmul.f32 0.70710677, %v344_v7 }
  0x8b   :  { %v67_v9 = vmul.f32 %v347_v8, %v347_v8 }
  0x8d   :  { %v68_v10 = vmin.f32 %v67_v9, 16.0 }
  0x8e   :  { %v60_v11 = vpop.f32.mrf.mxu0 }
  0x8f   :  { %v69_v12 = vmul.f32 2.1237322e-06, %v68_v10  ;;  %v80_v13 = vmul.f32 3.8918573e-05, %v68_v10  ;;  %v351_v14 = vadd.f32 %v263_v5, %v60_v11 }
  0x91   :  { %v70_v15 = vadd.f32 0.00028619796, %v69_v12  ;;  %v81_v16 = vadd.f32 0.001143296, %v80_v13  ;;  %v354_v17 = vmul.f32 0.70710677, %v351_v14 }
  0x93   :  { %v82_v18 = vmul.f32 %v81_v16, %v68_v10  ;;  %v107_v19 = vmul.f32 %v354_v17, %v354_v17  ;;  %v71_v20 = vmul.f32 %v70_v15, %v68_v10 }
  0x95   :  { %v83_v21 = vadd.f32 0.014752088, %v82_v18  ;;  %v108_v22 = vmin.f32 %v107_v19, 16.0  ;;  %v72_v27 = vadd.f32 0.0036580483, %v71_v20 }
  0x97   :  { %v84_v23 = vmul.f32 %v83_v21, %v68_v10  ;;  %v109_v25 = vmul.f32 2.1237322e-06, %v108_v22  ;;  %v120_v26 = vmul.f32 3.8918573e-05, %v108_v22  ;;  %v73_v35 = vmul.f32 %v72_v27, %v68_v10 }
  0x98   :  { %v64_v27 = vmul.f32 0.5, %v351_v14 }
  0x99   :  { %v85_v28 = vadd.f32 0.112945676, %v84_v23  ;;  %v110_v29 = vadd.f32 0.00028619796, %v109_v25  ;;  %v121_v30 = vadd.f32 0.001143296, %v120_v26 }
  0x9a   :  { %v74_v42 = vadd.f32 0.05243302, %v73_v35  ;;  %v63_v26 = vmul.f32 0.5, %v344_v7 }
  0x9b   :  { %v86_v31 = vmul.f32 %v85_v28, %v68_v10  ;;  %v111_v33 = vmul.f32 %v110_v29, %v108_v22  ;;  %v122_v34 = vmul.f32 %v121_v30, %v108_v22 }
  0x9c   :  { %v75_v48 = vmul.f32 %v74_v42, %v68_v10 }
  0x9d   :  { %v87_v36 = vadd.f32 0.4994258, %v86_v31  ;;  %v112_v37 = vadd.f32 0.0036580483, %v111_v33  ;;  %v123_v38 = vadd.f32 0.014752088, %v122_v34 }
  0x9e   :  { %v76_v53 = vadd.f32 0.18741608, %v75_v48 }
  0x9f   :  { %v88_v39 = vmul.f32 %v87_v36, %v68_v10  ;;  %v124_v41 = vmul.f32 %v123_v38, %v108_v22  ;;  %v113_v44 = vmul.f32 %v112_v37, %v108_v22 }
  0xa0   :  { %v77_v58 = vmul.f32 %v76_v53, %v68_v10 }
  0xa1   :  { %v89_v43 = vadd.f32 1.0, %v88_v39  ;;  %v125_v45 = vadd.f32 0.112945676, %v124_v41  ;;  %v114_v49 = vadd.f32 0.05243302, %v113_v44 }
  0xa2   :  { %v78_v0 = vadd.f32 1.1283791, %v77_v58 }
  0xa3   :  { %265 = vrcp.f32 %v89_v43  ;;  %v126_v47 = vmul.f32 %v125_v45, %v108_v22  ;;  %v115_v55 = vmul.f32 %v114_v49, %v108_v22  ;;  %v101_v60 = vand.u32 2147483648, %v89_v43 }
  0xa4   :  { %v99_v62 = vand.u32 2147483647, %v89_v43  ;;  %vm95_vm2 = vweird.f32 %v89_v43  ;;  %v79_v9 = vmul.f32 %v78_v0, %v347_v8 }
  0xa5   :  { %v127_v50 = vadd.f32 0.4994258, %v126_v47  ;;  %v116_v61 = vadd.f32 0.18741608, %v115_v55  ;;  %v102_v3 = vor.u32 1.1754944e-38, %v101_v60 }
  0xa6   :  { %vm100_vm4 = vcmp.eq.f32.partialorder %v99_v62, 8.507059e+37 }
  0xa7   :  { %v128_v51 = vmul.f32 %v127_v50, %v108_v22  ;;  %v117_v4 = vmul.f32 %v116_v61, %v108_v22 }
  0xa9   :  { %v266_v52 = vpop.eup %265  ;;  %v129_v56 = vadd.f32 1.0, %v128_v51  ;;  %v118_v10 = vadd.f32 1.1283791, %v117_v4 }
  0xaa   :  { %v91_v54 = vmul.f32 %v266_v52, %v89_v43  ;;  %vm96_vm1 = vweird.f32 %v266_v52 }
  0xab   :  { %267 = vrcp.f32 %v129_v56  ;;  %vm97_vm3 = vmor %vm95_vm2, %vm96_vm1  ;;  %v141_v12 = vand.u32 2147483648, %v129_v56  ;;  %v139_v16 = vand.u32 2147483647, %v129_v56  ;;  %vm135_vm6 = vweird.f32 %v129_v56 }
  0xac   :  { %v92_v57 = vsub.f32 1.0, %v91_v54  ;;  %v119_v21 = vmul.f32 %v118_v10, %v354_v17  ;;  %v264_v17 = vld [vmem:[%s386_s4] ss:$0 sm:$0xff] }
  0xad   :  { %v142_v19 = vor.u32 1.1754944e-38, %v141_v12  ;;  %vm140_vm8 = vcmp.eq.f32.partialorder %v139_v16, 8.507059e+37 }
  0xae   :  { %v93_v59 = vmul.f32 %v266_v52, %v92_v57 }
  0xb0   :  { %v94_v63 = vadd.f32 %v266_v52, %v93_v59 }
  0xb1   :  { %v268_v1 = vpop.eup %267 }
  0xb2   :  { %v98_v2 = vsel %vm97_vm3, %v266_v52, %v94_v63  ;;  %v131_v5 = vmul.f32 %v268_v1, %v129_v56  ;;  %vm136_vm5 = vweird.f32 %v268_v1 }
  0xb3   :  { %v103_v6 = vsel %vm100_vm4, %v102_v3, %v98_v2  ;;  %vm137_vm7 = vmor %vm135_vm6, %vm136_vm5 }
  0xb4   :  { %v132_v11 = vsub.f32 1.0, %v131_v5  ;;  %v104_v13 = vmul.f32 %v103_v6, %v79_v9 }
  0xb6   :  { %v133_v15 = vmul.f32 %v268_v1, %v132_v11  ;;  %v235_v20 = vclamps-f32 %v104_v13, 1.0 }
  0xb8   :  { %v134_v18 = vadd.f32 %v268_v1, %v133_v15  ;;  %v147_v25 = vadd.f32 1.0, %v235_v20 }
  0xba   :  { %v138_v22 = vsel %vm137_vm7, %v268_v1, %v134_v18  ;;  %v149_v29 = vmul.f32 %v147_v25, %v63_v26 }
  0xbb   :  { %v143_v23 = vsel %vm140_vm8, %v142_v19, %v138_v22 }
  0xbc   :  { %v144_v24 = vmul.f32 %v143_v23, %v119_v21 }
  0xbe   :  { %v236_v8 = vclamps-f32 %v144_v24, 1.0 }
  0xc0   :  { %v148_v28 = vadd.f32 1.0, %v236_v8 }
  0xc2   :  { %v150_v30 = vmul.f32 %v148_v28, %v64_v27 }
  0xc4   :  { %v151_v31 = vpack.c.bf16 %v150_v30, %v149_v29 }
  0xc6   :  { %253 = vmatmul.msk.bf16.vlgmr.msra.gmra.mxu1 %vm188_vm9, %v151_v31 }
 0x143   :  { %v201_v32 = vpop.f32.mrf.mxu1 }
 0x144   :  { %v202_v33 = vadd.f32 %v264_v17, %v201_v32 }
 0x146   :  { %206 = vst.msk [vmem:[#allocation2] sm:$0xff] %vm45_vm0, %v202_v33 }
 0x14b   :  { %v203_v7 = vpop.f32.mrf.mxu1 }
 0x14c   :  { %v204_v14 = vadd.f32 %v264_v17, %v203_v7 }
 0x14e   :  { %207 = vst.msk [vmem:[#allocation2 + $0x8] sm:$0xff] %vm45_vm0, %v204_v14 }
 0x14f   :  { %220 = dma.vmem_to_hbm [thread:$0]  %s213_s10, 256, %s215_s13, [#allocation3], %s296_s14, %s296_s14, %s297_s15  }
 0x150   :  { %293 = dma.done.wait [#allocation3], 256  }
 0x151   :  { %294 = vsyncadd [#allocation3], 4294967040 }
 0x152   :  { %225 = vsyncpa [#allocation3], 1 }

</bundles_post_ra>
